<compile_context>
chip_gen: v6e
topology: v6e:2x2x1
jax: 0.10.0
libtpu: 0.0.40
codegen_flags: <defaults>
</compile_context>

<pallas_src>
import jax
import jax.numpy as jnp
from jax.experimental import pallas as pl
from jax.experimental.pallas import tpu as pltpu


def _mlp_kernel(x_ref, *refs):
    """refs = (w1, b1, ..., w_{L-1}, b_{L-1}, w_last_col, b_last, out_ref).

    Feature-major: x_ref is (in_dim, TM) bf16, hidden weights are (out, in)
    bf16, biases are (out, 1) f32.  Hidden layers use the MXU with f32
    accumulation; the 1-wide final layer is a VPU multiply + sublane
    reduction producing a lane-dense (1, TM) probability row.
    """
    out_ref = refs[-1]
    param_refs = refs[:-1]
    n_layers = len(param_refs) // 2          # hidden layers + final layer
    n_hidden = n_layers - 1

    h_bf16 = x_ref[...]                      # (in_dim, TM) bf16
    h_f32 = h_bf16.astype(jnp.float32)
    for i in range(n_hidden):
        w = param_refs[2 * i][...]           # (out_i, in_i) bf16
        b = param_refs[2 * i + 1][...]       # (out_i, 1)   f32
        z = jnp.dot(w, h_bf16, preferred_element_type=jnp.float32) + b
        h_f32 = jnp.maximum(z, 0.0)          # (out_i, TM) f32
        h_bf16 = h_f32.astype(jnp.bfloat16)  # feed next MXU layer at bf16 rate

    # Final layer (out_features == 1): VPU broadcast-mul + sublane reduction.
    w_last = param_refs[-2][...]             # (H_last, 1) f32
    b_last = param_refs[-1][...]             # (1, 1)      f32
    logits = jnp.sum(h_f32 * w_last, axis=0, keepdims=True) + b_last  # (1, TM)
    out_ref[...] = jax.nn.sigmoid(logits)


def _round_up(n, m):
    return ((n + m - 1) // m) * m


def _choose_tm(padded, cap=8192):
    """Largest multiple of 128 dividing `padded`, <= cap, preferring >=2 steps."""
    best = 128
    t = 128
    limit = min(cap, padded)
    while t <= limit:
        if padded % t == 0 and (padded // t >= 2 or padded == 128):
            best = t
        t += 128
    return best


def mlp_binary_classifier_forward(x, weights, biases, *, tm=None, tm_cap=8192):
    """MLP binary-classifier forward pass as a single tiled Pallas kernel.

    Args:
      x:       (batch, in_dim) float32, already normalized.
      weights: list of PyTorch-layout nn.Linear weights, shapes (out_i, in_i).
               The last entry has out == 1.
      biases:  list of (out_i,) float32 biases.
      tm:      optional batch tile size (multiple of 128, must divide the
               batch padded to a multiple of 128).
    Returns:
      (batch,) float32 probabilities == torch.sigmoid(mlp(x)).squeeze(-1).
    """
    batch, in_dim = x.shape
    n_layers = len(weights)
    assert n_layers == len(biases) and n_layers >= 1
    assert weights[-1].shape[0] == 1                   # final out_features == 1
    assert weights[0].shape[1] == in_dim

    padded = _round_up(batch, 128)
    if tm is None:
        tm = _choose_tm(padded, tm_cap)
    assert tm % 128 == 0 and padded % tm == 0
    num_tiles = padded // tm

    # Feature-major bf16 x stream: (in_dim, padded), batch on the lane axis.
    if padded != batch:
        x = jnp.pad(x, ((0, padded - batch), (0, 0)))
    x_t = x.T.astype(jnp.bfloat16)

    const2d = lambda i: (0, 0)        # params: same block every step (resident)

    args = [x_t]
    in_specs = [pl.BlockSpec((in_dim, tm), lambda i: (0, i))]
    for w, b in zip(weights[:-1], biases[:-1]):
        w_bf = jnp.asarray(w, jnp.bfloat16)                    # (out, in)
        b_col = jnp.asarray(b, jnp.float32).reshape(-1, 1)     # (out, 1)
        args += [w_bf, b_col]
        in_specs += [pl.BlockSpec(w_bf.shape, const2d),
                     pl.BlockSpec(b_col.shape, const2d)]
    # Final layer kept in f32: weight as an (H_last, 1) column for the VPU
    # multiply + sublane reduction.
    w_last_col = jnp.asarray(weights[-1], jnp.float32).reshape(-1, 1)
    b_last = jnp.asarray(biases[-1], jnp.float32).reshape(1, 1)
    args += [w_last_col, b_last]
    in_specs += [pl.BlockSpec(w_last_col.shape, const2d),
                 pl.BlockSpec(b_last.shape, const2d)]

    # Advisory cost estimate (helps XLA schedule the wrapper-side transpose /
    # cast around the custom call).
    flops = 2 * padded * sum(int(w.shape[0]) * int(w.shape[1]) for w in weights)
    param_bytes = 0
    for i, (w, b) in enumerate(zip(weights, biases)):
        wb = 2 if i < n_layers - 1 else 4
        param_bytes += int(w.size) * wb + int(b.size) * 4
    bytes_accessed = padded * in_dim * 2 + padded * 4 + param_bytes
    cost = pl.CostEstimate(flops=flops, transcendentals=padded,
                           bytes_accessed=bytes_accessed)

    # Real VMEM footprint (double-buffered x + out, live activations, params)
    # plus headroom; well under v7x's 64 MiB.
    max_width = max([in_dim] + [int(w.shape[0]) for w in weights])
    vmem_bytes = (2 * in_dim * tm * 2          # double-buffered bf16 x tile
                  + 2 * tm * 4                 # double-buffered f32 out row
                  + 4 * max_width * tm * 6     # live f32 + bf16 activations
                  + 2 * param_bytes)
    vmem_limit = min(64 * 1024 * 1024,
                     max(16 * 1024 * 1024, int(vmem_bytes) + 4 * 1024 * 1024))

    out = pl.pallas_call(
        _mlp_kernel,
        out_shape=jax.ShapeDtypeStruct((1, padded), jnp.float32),
        grid=(num_tiles,),
        in_specs=in_specs,
        out_specs=pl.BlockSpec((1, tm), lambda i: (0, i)),
        compiler_params=pltpu.CompilerParams(
            dimension_semantics=("parallel",),
            vmem_limit_bytes=vmem_limit),
        cost_estimate=cost,
    )(*args)
    return out[0, :batch]        # lane-dense row -> (batch,), drop padding


def _init_params(key, in_dim, hid_sizes):
    """Deterministic synthetic params in PyTorch nn.Linear layout (out, in)."""
    sizes = [in_dim] + list(hid_sizes) + [1]
    weights, biases = [], []
    for i in range(len(sizes) - 1):
        key, kw, kb = jax.random.split(key, 3)
        weights.append(0.1 * jax.random.normal(
            kw, (sizes[i + 1], sizes[i]), dtype=jnp.float32))     # (out, in)
        biases.append(0.1 * jax.random.normal(
            kb, (sizes[i + 1],), dtype=jnp.float32))              # (out,)
    return weights, biases, key


if __name__ == "__main__":
    key = jax.random.PRNGKey(0)
    in_dim = 16
    hid_sizes = [32, 32]
    weights, biases, key = _init_params(key, in_dim, hid_sizes)

    def reference(x):
        # f32 reference matching the PyTorch forward.
        h = x
        for i, (w, b) in enumerate(zip(weights, biases)):
            h = h @ w.T + b
            if i < len(weights) - 1:
                h = jnp.maximum(h, 0.0)
        return jax.nn.sigmoid(h)[:, 0]

    # batch=2 exercises the single-tile (padded-to-128) path; batch=300 pads
    # to 384 and runs 3 grid steps with last-tile padding.
    for batch in (2, 300):
        key, kx = jax.random.split(key)
        x = jax.random.normal(kx, (batch, in_dim), dtype=jnp.float32)
        probs = jax.block_until_ready(
            mlp_binary_classifier_forward(x, weights, biases))
        assert probs.shape == (batch,)
        assert bool(jnp.all((probs >= 0.0) & (probs <= 1.0)))
        ref = reference(x)
        # bf16 x / hidden weights inside the kernel -> loosened tolerance.
        assert bool(jnp.allclose(probs, ref, atol=2e-2, rtol=2e-2)), (
            float(jnp.max(jnp.abs(probs - ref))))

    print("KERNEL_OK")
</pallas_src>

<mosaic_0001>
module attributes {stable_mosaic.version = 11 : i64} {
  func.func @_mlp_kernel(%arg0: i32, %arg1: memref<16x128xbf16, #tpu.memory_space<vmem>>, %arg2: memref<32x16xbf16, #tpu.memory_space<vmem>>, %arg3: memref<32x1xf32, #tpu.memory_space<vmem>>, %arg4: memref<32x32xbf16, #tpu.memory_space<vmem>>, %arg5: memref<32x1xf32, #tpu.memory_space<vmem>>, %arg6: memref<32x1xf32, #tpu.memory_space<vmem>>, %arg7: memref<1x1xf32, #tpu.memory_space<vmem>>, %arg8: memref<1x128xf32, #tpu.memory_space<vmem>>) attributes {dimension_semantics = [#tpu.dimension_semantics<parallel>], iteration_bounds = array<i64: 1>, scalar_prefetch = 0 : i64, scratch_operands = 0 : i64, tpu.core_type = #tpu.core_type<tc>, window_params = [{transform_indices = @transform_0, window_bounds = array<i64: 16, 128>}, {pipeline_mode = #tpu.pipeline_mode<synchronous>, transform_indices = @transform_1, window_bounds = array<i64: 32, 16>}, {pipeline_mode = #tpu.pipeline_mode<synchronous>, transform_indices = @transform_2, window_bounds = array<i64: 32, 1>}, {pipeline_mode = #tpu.pipeline_mode<synchronous>, transform_indices = @transform_3, window_bounds = array<i64: 32, 32>}, {pipeline_mode = #tpu.pipeline_mode<synchronous>, transform_indices = @transform_4, window_bounds = array<i64: 32, 1>}, {pipeline_mode = #tpu.pipeline_mode<synchronous>, transform_indices = @transform_5, window_bounds = array<i64: 32, 1>}, {pipeline_mode = #tpu.pipeline_mode<synchronous>, transform_indices = @transform_6, window_bounds = array<i64: 1, 1>}, {transform_indices = @transform_7, window_bounds = array<i64: 1, 128>}]} {
    %c0 = arith.constant 0 : index
    %c0_0 = arith.constant 0 : index
    %0 = vector.load %arg1[%c0, %c0_0] : memref<16x128xbf16, #tpu.memory_space<vmem>>, vector<16x128xbf16>
    %c0_1 = arith.constant 0 : index
    %c0_2 = arith.constant 0 : index
    %1 = vector.load %arg2[%c0_1, %c0_2] : memref<32x16xbf16, #tpu.memory_space<vmem>>, vector<32x16xbf16>
    %c0_3 = arith.constant 0 : index
    %c0_4 = arith.constant 0 : index
    %2 = vector.load %arg3[%c0_3, %c0_4] : memref<32x1xf32, #tpu.memory_space<vmem>>, vector<32x1xf32>
    %cst = arith.constant dense<0.000000e+00> : vector<32x128xf32>
    %3 = tpu.matmul %1, %0, %cst {dimension_numbers = #tpu.dot_dimension_numbers<[1], [0], [0], [1], [0, 0, 1, 1], [], []>} : vector<32x16xbf16>, vector<16x128xbf16>, vector<32x128xf32> -> vector<32x128xf32>
    %4 = vector.broadcast %2 : vector<32x1xf32> to vector<32x128xf32>
    %5 = arith.addf %3, %4 : vector<32x128xf32>
    %cst_5 = arith.constant 0.000000e+00 : f32
    %6 = vector.broadcast %cst_5 : f32 to vector<32x128xf32>
    %7 = arith.maximumf %5, %6 : vector<32x128xf32>
    %8 = arith.truncf %7 : vector<32x128xf32> to vector<32x128xbf16>
    %c0_6 = arith.constant 0 : index
    %c0_7 = arith.constant 0 : index
    %9 = vector.load %arg4[%c0_6, %c0_7] : memref<32x32xbf16, #tpu.memory_space<vmem>>, vector<32x32xbf16>
    %c0_8 = arith.constant 0 : index
    %c0_9 = arith.constant 0 : index
    %10 = vector.load %arg5[%c0_8, %c0_9] : memref<32x1xf32, #tpu.memory_space<vmem>>, vector<32x1xf32>
    %cst_10 = arith.constant dense<0.000000e+00> : vector<32x128xf32>
    %11 = tpu.matmul %9, %8, %cst_10 {dimension_numbers = #tpu.dot_dimension_numbers<[1], [0], [0], [1], [0, 0, 1, 1], [], []>} : vector<32x32xbf16>, vector<32x128xbf16>, vector<32x128xf32> -> vector<32x128xf32>
    %12 = vector.broadcast %10 : vector<32x1xf32> to vector<32x128xf32>
    %13 = arith.addf %11, %12 : vector<32x128xf32>
    %cst_11 = arith.constant 0.000000e+00 : f32
    %14 = vector.broadcast %cst_11 : f32 to vector<32x128xf32>
    %15 = arith.maximumf %13, %14 : vector<32x128xf32>
    %c0_12 = arith.constant 0 : index
    %c0_13 = arith.constant 0 : index
    %16 = vector.load %arg6[%c0_12, %c0_13] : memref<32x1xf32, #tpu.memory_space<vmem>>, vector<32x1xf32>
    %c0_14 = arith.constant 0 : index
    %c0_15 = arith.constant 0 : index
    %17 = vector.load %arg7[%c0_14, %c0_15] : memref<1x1xf32, #tpu.memory_space<vmem>>, vector<1x1xf32>
    %18 = vector.broadcast %16 : vector<32x1xf32> to vector<32x128xf32>
    %19 = arith.mulf %15, %18 : vector<32x128xf32>
    %cst_16 = arith.constant dense<0.000000e+00> : vector<128xf32>
    %20 = vector.multi_reduction <add>, %19, %cst_16 [0] : vector<32x128xf32> to vector<128xf32>
    %21 = vector.shape_cast %20 : vector<128xf32> to vector<1x128xf32>
    %22 = vector.broadcast %17 : vector<1x1xf32> to vector<1x128xf32>
    %23 = arith.addf %21, %22 : vector<1x128xf32>
    %24 = arith.negf %23 : vector<1x128xf32>
    %25 = math.exp %24 : vector<1x128xf32>
    %cst_17 = arith.constant 1.000000e+00 : f32
    %26 = vector.broadcast %cst_17 : f32 to vector<1x128xf32>
    %27 = arith.addf %26, %25 : vector<1x128xf32>
    %28 = arith.divf %26, %27 : vector<1x128xf32>
    %c0_18 = arith.constant 0 : index
    %c0_19 = arith.constant 0 : index
    %29 = vector.load %arg8[%c0_18, %c0_19] : memref<1x128xf32, #tpu.memory_space<vmem>>, vector<1x128xf32>
    tpu.vector_store %arg8[%c0_18, %c0_19], %28 {strides = array<i32>} : memref<1x128xf32, #tpu.memory_space<vmem>>, vector<1x128xf32>,
    return
  }
  func.func @transform_0(%arg0: i32) -> (i32, i32) {
    %c0_i32 = arith.constant 0 : i32
    %c0_i32_0 = arith.constant 0 : i32
    return %c0_i32, %arg0 : i32, i32
  }
  func.func @transform_1(%arg0: i32) -> (i32, i32) {
    %c0_i32 = arith.constant 0 : i32
    %c0_i32_0 = arith.constant 0 : i32
    %c0_i32_1 = arith.constant 0 : i32
    return %c0_i32, %c0_i32_0 : i32, i32
  }
  func.func @transform_2(%arg0: i32) -> (i32, i32) {
    %c0_i32 = arith.constant 0 : i32
    %c0_i32_0 = arith.constant 0 : i32
    %c0_i32_1 = arith.constant 0 : i32
    return %c0_i32, %c0_i32_0 : i32, i32
  }
  func.func @transform_3(%arg0: i32) -> (i32, i32) {
    %c0_i32 = arith.constant 0 : i32
    %c0_i32_0 = arith.constant 0 : i32
    %c0_i32_1 = arith.constant 0 : i32
    return %c0_i32, %c0_i32_0 : i32, i32
  }
  func.func @transform_4(%arg0: i32) -> (i32, i32) {
    %c0_i32 = arith.constant 0 : i32
    %c0_i32_0 = arith.constant 0 : i32
    %c0_i32_1 = arith.constant 0 : i32
    return %c0_i32, %c0_i32_0 : i32, i32
  }
  func.func @transform_5(%arg0: i32) -> (i32, i32) {
    %c0_i32 = arith.constant 0 : i32
    %c0_i32_0 = arith.constant 0 : i32
    %c0_i32_1 = arith.constant 0 : i32
    return %c0_i32, %c0_i32_0 : i32, i32
  }
  func.func @transform_6(%arg0: i32) -> (i32, i32) {
    %c0_i32 = arith.constant 0 : i32
    %c0_i32_0 = arith.constant 0 : i32
    %c0_i32_1 = arith.constant 0 : i32
    return %c0_i32, %c0_i32_0 : i32, i32
  }
  func.func @transform_7(%arg0: i32) -> (i32, i32) {
    %c0_i32 = arith.constant 0 : i32
    %c0_i32_0 = arith.constant 0 : i32
    return %c0_i32, %arg0 : i32, i32
  }
}

</mosaic_0001>

<bundles_post_ra>
// kernel: tpu_custom_call.1
= control target key start
LH: loop header
LB: loop body
LE: loop exit
PB: predicated region body
PF: predicated region fallthrough
CT: control target
= control target key end

     0   :  { %s472_s0 = inlined_call_operand.vmem [shape: bf16[16,128], index: 0, kind: input, shape index: {}]   ;;  %s473_s1 = inlined_call_operand.vmem [shape: bf16[32,16], index: 1, kind: input, shape index: {}]   ;;  %s474_s2 = inlined_call_operand.vmem [shape: f32[32,1], index: 2, kind: input, shape index: {}]   ;;  %s475_s3 = inlined_call_operand.vmem [shape: bf16[32,32], index: 3, kind: input, shape index: {}]   ;;  %s476_s4 = inlined_call_operand.vmem [shape: f32[32,1], index: 4, kind: input, shape index: {}]   ;;  %s477_s5 = inlined_call_operand.vmem [shape: f32[32,1], index: 5, kind: input, shape index: {}]   ;;  %s478_s6 = inlined_call_operand.<no memory space> [shape: f32[1,1], index: 6, kind: input, shape index: {}]   ;;  %s479_s7 = inlined_call_operand.hbm [shape: f32[1,128], index: 7, kind: output, shape index: {}]  }
   0x1   :  { %v12_v0 = vstv %s478_s6 }
   0x2   :  { %13 = vst [vmem:[#allocation2] sm:$0x1] %v12_v0 }
   0x3   :  { %v340_v1 = vld [vmem:[%s472_s0] sm:$0xff]   ;;  %vm76_vm0 = vcmask 130048   ;;  %v342_v3 = vld [vmem:[%s473_s1 + $0x8] sm:$0xff]   ;;  %v371_v4 = vmov 0   ;;  %v38_v5 = vld [vmem:[%s474_s2 + $0x10] sm:$0xff] }
   0x4   :  { %v341_v2 = vld [vmem:[%s473_s1] sm:$0xff]   ;;  %322 = vmatprep.subr.bf16.mxu0 %v340_v1  ;;  %338 = vset.pattern.permute.xlu0 %v371_v4  ;;  %v39_v7 = vld [vmem:[%s474_s2 + $0x18] sm:$0xff]  ;;  %v37_v8 = vld [vmem:[%s474_s2 + $0x8] sm:$0xff] }
   0x5   :  { %323 = vmatpush3.bf16.msra.mxu0 %v340_v1  ;;  %324 = vmatprep.mubr.msk.bf16.mxu0 %vm76_vm0, %v341_v2  ;;  %v36_v6 = vld [vmem:[%s474_s2] sm:$0xff] }
   0x6   :  { %52 = vperm.xlu0 %338, %v38_v5   ;;  %339 = vset.pattern.permute.xlu1 %v371_v4 }
   0x7   :  { %42 = vperm.xlu1 %339, %v36_v6  }
   0x8   :  { %325 = vmatmul.mubr.msk.bf16.vlgmr.msra.gmra.mxu0 %vm76_vm0, %v342_v3 }
   0xa   :  { %57 = vperm.xlu0 %338, %v39_v7  }
   0xb   :  { %14 = vsyncpa [#allocation4], 0  ;;  %v142_v9 = vld [vmem:[%s476_s4] sm:$0xff]  ;;  %47 = vperm.xlu1 %339, %v37_v8   ;;  %v143_v10 = vld [vmem:[%s476_s4 + $0x8] sm:$0xff]  ;;  %vm176_vm1 = vcmask 261120   ;;  %v279_v0 = vlaneseq }
   0xc   :  { %v144_v11 = vld [vmem:[%s476_s4 + $0x10] sm:$0xff]  ;;  %v145_v12 = vld [vmem:[%s476_s4 + $0x18] sm:$0xff]  ;;  %v236_v13 = vld [vmem:[%s477_s5] sm:$0xff] }
   0xd   :  { %v237_v14 = vld [vmem:[%s477_s5 + $0x8] sm:$0xff]  ;;  %v238_v15 = vld [vmem:[%s477_s5 + $0x10] sm:$0xff]  ;;  %v239_v16 = vld [vmem:[%s477_s5 + $0x18] sm:$0xff]  ;;  %v280_v3 = vshrl.u32 %v279_v0, 7 }
   0xe   :  { %148 = vperm.xlu0 %338, %v142_v9   ;;  %v240_v17 = vld [vmem:[#allocation2] sm:$0x1]  ;;  %v344_v37 = vld [vmem:[%s475_s3 + $0x8] sm:$0xff]  }
   0xf   :  { %153 = vperm.xlu1 %339, %v143_v10   ;;  %v343_v18 = vld [vmem:[%s475_s3] sm:$0xff]   ;;  %v281_v6 = vsub.s32 0, %v280_v3  ;;  %s372_s3 = smov [#allocation3]  }
  0x10   :  { %332 = vmatprep.mubr.msk.bf16.mxu1 %vm176_vm1, %v343_v18  ;;  %s297_s8 = sshll.u32 %s372_s3, 4  ;;  %s298_s8 = int_to_ptr.vmem [resolvable:$true] %s297_s8 }
  0x11   :  { %s349_s6 = scalar_lea.vmem %s298_s8, 16  ;;  %s353_s9 = scalar_lea.vmem %s298_s8, 32 }
  0x12   :  { %158 = vperm.xlu0 %338, %v144_v11   ;;  %p350_p0 = scmp.ne.s32.totalorder %s298_s8, %s349_s6  ;;  %p354_p1 = scmp.lt.s32.totalorder %s298_s8, %s298_s8 }
  0x13   :  { %163 = vperm.xlu1 %339, %v145_v12   ;;  %p355_p2 = scmp.lt.s32.totalorder %s353_s9, %s349_s6 }
  0x15   :  { %p356_p3 = por %p355_p2, %p354_p1 }
  0x16   :  { %243 = vperm.xlu0 %338, %v236_v13  }
  0x17   :  { %248 = vperm.xlu1 %339, %v237_v14   ;;  %p357_p4 = pnand %p356_p3, %p350_p0 }
  0x1a   :  { %253 = vperm.xlu0 %338, %v238_v15  }
  0x1b   :  { %258 = vperm.xlu1 %339, %v239_v16  }
  0x1e   :  { %276 = vperm.xlu0 %338, %v240_v17  }
  0x81   :  { %v53_v19 = vpop.permute.xlu0 %52 }
  0x82   :  { %v43_v20 = vpop.permute.xlu1 %42 }
  0x85   :  { %v58_v24 = vpop.permute.xlu0 %57 }
  0x86   :  { %v48_v28 = vpop.permute.xlu1 %47 }
  0x89   :  { %v149_v38 = vpop.permute.xlu0 %148 }
  0x8a   :  { %v154_v39 = vpop.permute.xlu1 %153 }
  0x8d   :  { %v159_v40 = vpop.permute.xlu0 %158 }
  0x8e   :  { %v164_v42 = vpop.permute.xlu1 %163 }
  0x91   :  { %v244_v47 = vpop.permute.xlu0 %243 }
  0x92   :  { %v249_v52 = vpop.permute.xlu1 %248 }
  0x95   :  { %v254_v58 = vpop.permute.xlu0 %253 }
  0x96   :  { %v259_v61 = vpop.permute.xlu1 %258 }
  0x99   :  { %v277_v8 = vpop.permute.xlu0 %276 }
  0x9a   :  { %v282_v10 = vrot.slane %v277_v8, %v281_v6 }
  0xc8   :  { %v326_v21 = vpop.f32.mrf.mxu0 }
  0xc9   :  { %v126_v23 = vadd.f32 %v326_v21, %v53_v19 }
  0xca   :  { %v117_v22 = vpop.f32.mrf.mxu0 }
  0xcb   :  { %v118_v26 = vadd.f32 %v117_v22, %v43_v20  ;;  %v134_v30 = vmax.f32 %v126_v23, 0.0 }
  0xcc   :  { %v327_v25 = vpop.f32.mrf.mxu0 }
  0xcd   :  { %v129_v27 = vadd.f32 %v327_v25, %v58_v24  ;;  %v132_v33 = vmax.f32 %v118_v26, 0.0 }
  0xce   :  { %v120_v29 = vpop.f32.mrf.mxu0 }
  0xcf   :  { %v135_v31 = vmax.f32 %v129_v27, 0.0  ;;  %v121_v32 = vadd.f32 %v120_v29, %v48_v28 }
  0xd1   :  { %v133_v34 = vmax.f32 %v121_v32, 0.0  ;;  %v137_v35 = vpack.c.bf16 %v135_v31, %v134_v30 }
  0xd3   :  { %v136_v36 = vpack.c.bf16 %v133_v34, %v132_v33  ;;  %328 = vmatprep.subr.bf16.mxu1 %v137_v35 }
  0xd4   :  { %329 = vmatpush3.bf16.msra.mxu1 %v137_v35 }
  0xd5   :  { %330 = vmatprep.subr.bf16.mxu1 %v136_v36 }
  0xd8   :  { %331 = vmatpush3.bf16.msra.mxu1 %v136_v36 }
  0xdb   :  { %333 = vmatmul.mubr.msk.bf16.vlgmr.msra.gmra.mxu1 %vm176_vm1, %v344_v37 }
 0x19b   :  { %v334_v41 = vpop.f32.mrf.mxu1 }
 0x19c   :  { %v226_v46 = vadd.f32 %v334_v41, %v159_v40 }
 0x19d   :  { %v217_v43 = vpop.f32.mrf.mxu1 }
 0x19e   :  { %v218_v44 = vadd.f32 %v217_v43, %v149_v38  ;;  %v234_v53 = vmax.f32 %v226_v46, 0.0 }
 0x19f   :  { %v335_v45 = vpop.f32.mrf.mxu1 }
 0x1a0   :  { %v232_v49 = vmax.f32 %v218_v44, 0.0  ;;  %v229_v50 = vadd.f32 %v335_v45, %v164_v42  ;;  %v263_v59 = vmul.f32 %v254_v58, %v234_v53 }
 0x1a1   :  { %v220_v48 = vpop.f32.mrf.mxu1 }
 0x1a2   :  { %v221_v51 = vadd.f32 %v220_v48, %v154_v39  ;;  %v261_v55 = vmul.f32 %v244_v47, %v232_v49  ;;  %v235_v56 = vmax.f32 %v229_v50, 0.0 }
 0x1a4   :  { %v233_v54 = vmax.f32 %v221_v51, 0.0  ;;  %v264_v62 = vmul.f32 %v259_v61, %v235_v56 }
 0x1a6   :  { %v262_v57 = vmul.f32 %v249_v52, %v233_v54 }
 0x1a8   :  { %v265_v60 = vadd.f32 %v262_v57, %v261_v55 }
 0x1aa   :  { %v266_v63 = vadd.f32 %v265_v60, %v263_v59 }
 0x1ac   :  { %v267_v1 = vadd.f32 %v266_v63, %v264_v62 }
 0x1ae   :  { %v268_v2 = vrot.slane %v267_v1, 4 }
 0x1b0   :  { %v269_v4 = vadd.f32 %v268_v2, %v267_v1 }
 0x1b2   :  { %v270_v5 = vrot.slane %v269_v4, 2 }
 0x1b4   :  { %v271_v7 = vadd.f32 %v270_v5, %v269_v4 }
 0x1b6   :  { %v272_v9 = vrot.slane %v271_v7, 1 }
 0x1b8   :  { %v273_v11 = vadd.f32 %v272_v9, %v271_v7 }
 0x1ba   :  { %v283_v12 = vadd.f32 %v282_v10, %v273_v11 }
 0x1bc   :  { %v314_v13 = vmul.f32 -1.442695, %v283_v12 }
 0x1be   :  { %345 = vpow2.f32 %v314_v13 }
 0x1cb   :  { %v346_v14 = vpop.eup %345 }
 0x1cc   :  { %v287_v15 = vadd.f32 1.0, %v346_v14 }
 0x1ce   :  { %347 = vrcp.f32 %v287_v15 }
 0x1db   :  { %v348_v16 = vpop.eup %347 }
 0x1dc   :  { %290 = vst [vmem:[#allocation3] sm:$0x1] %v348_v16 }
 0x1dd   :  { %360 = shalt.err (!%p357_p4)
}
 0x1de   :  { %300 = dma.vmem_to_hbm [thread:$0]  %s298_s8, 16, %s479_s7, [#allocation4]  }
 0x1df   :  { %369 = dma.done.wait [#allocation4], 16  }
 0x1e0   :  { %370 = vsyncadd [#allocation4], 4294967280 }
 0x1e1   :  { %304 = vsyncpa [#allocation4], 1 }

</bundles_post_ra>
